<compile_context>
chip_gen: v7x
topology: tpu7x:2x2x1
jax: 0.10.0
libtpu: 0.0.40
codegen_flags: <defaults>
</compile_context>

<pallas_src>
import jax
import jax.numpy as jnp
import numpy as np
from jax import lax
from jax.experimental import pallas as pl
from jax.experimental.pallas import tpu as pltpu


def neigh_agg_kernel(src_ref, tgt_ref,        # edge-index chunk (lane-major / sublane-major)
                     x_ref, w_ref, b_ref,     # resident inputs: x bf16, W^T bf16, bias f32
                     out_ref,                 # [num_node, D] f32 output (written at finalize)
                     h_ref, adj_ref):         # scratch: h [n, D] f32, adjacency [num_node, n] f32
    ek = tgt_ref.shape[0]          # edge-chunk size
    n_tgt = h_ref.shape[0]         # rows of x / h
    n_out = out_ref.shape[0]       # num_node

    # --- init (first chunk only): linear + ReLU on the MXU, zero the adjacency ---
    @pl.when(pl.program_id(0) == 0)
    def _init():
        h = jnp.dot(x_ref[...], w_ref[...], preferred_element_type=jnp.float32)  # bf16 x bf16 -> f32
        h_ref[...] = jnp.maximum(h + b_ref[...], 0.0)                            # bias + ReLU in f32
        adj_ref[...] = jnp.zeros_like(adj_ref)

    # --- per edge-chunk: adjacency accumulation, a single MXU matmul with K = ek ---
    src_row = src_ref[...]         # (1, ek)  int32, edges along lanes
    tgt_col = tgt_ref[...]         # (ek, 1)  int32, edges along sublanes
    # S[i, e] = 1 iff src[e] == i ; T[e, t] = 1 iff tgt[e] == t  (padded -1 matches nothing)
    s_onehot = (src_row == lax.broadcasted_iota(jnp.int32, (n_out, ek), 0)).astype(jnp.bfloat16)
    t_onehot = (tgt_col == lax.broadcasted_iota(jnp.int32, (ek, n_tgt), 1)).astype(jnp.bfloat16)
    # A[i, t] += #edges e in this chunk with src[e]==i and tgt[e]==t  (exact small ints in f32)
    adj_ref[...] += jnp.dot(s_onehot, t_onehot, preferred_element_type=jnp.float32)

    # --- finalize (last chunk): out = (A @ h) / clamp(degree, 1) ---
    @pl.when(pl.program_id(0) == pl.num_programs(0) - 1)
    def _finalize():
        adj = adj_ref[...]                                      # [num_node, n] f32 counts
        deg = jnp.sum(adj, axis=1, keepdims=True)               # degrees = row-sum of A (XLU)
        agg = jnp.dot(adj, h_ref[...], preferred_element_type=jnp.float32)  # one f32 matmul
        inv = 1.0 / jnp.maximum(deg, 1.0)                       # exact reciprocal, [num_node, 1]
        out_ref[...] = agg * inv


def _default_edge_chunk():
    # v5e's MXU is 128 deep -> K=128 already fills it; v6e/v7x are 256 deep.
    try:
        kind = jax.devices()[0].device_kind.lower()
    except Exception:
        kind = ""
    return 128 if "v5" in kind else 256


def neigh_agg(x, weight, bias, edge_index, num_node, *, edge_chunk=None):
    """x: [N, D] f32, weight: [D, D] (torch layout [out, in]), bias: [D],
    edge_index: [2, E] int32, num_node: int.  Returns [num_node, D] f32."""
    n, d = x.shape
    e = edge_index.shape[1]
    if edge_chunk is None:
        edge_chunk = _default_edge_chunk()
    num_chunks = max(1, (e + edge_chunk - 1) // edge_chunk)
    e_pad = num_chunks * edge_chunk

    src = edge_index[0].astype(jnp.int32)
    tgt = edge_index[1].astype(jnp.int32)
    pad = e_pad - e
    src_p = jnp.pad(src, (0, pad), constant_values=-1)      # -1 == "no edge"
    tgt_p = jnp.pad(tgt, (0, pad), constant_values=-1)
    src_lanes = src_p.reshape(num_chunks, 1, edge_chunk)    # edges on lanes   (scatter one-hot)
    tgt_cols = tgt_p.reshape(num_chunks, edge_chunk, 1)     # edges on sublanes (gather one-hot)

    x_bf = x.astype(jnp.bfloat16)         # bf16 matmul inputs, f32 accumulate (documented choice)
    w_t = weight.T.astype(jnp.bfloat16)   # [D_in, D_out] so the kernel does x @ w_t
    b2d = bias.reshape(1, d).astype(jnp.float32)

    grid_spec = pltpu.PrefetchScalarGridSpec(
        num_scalar_prefetch=0,
        grid=(num_chunks,),
        in_specs=[
            pl.BlockSpec((None, 1, edge_chunk), lambda i: (i, 0, 0)),   # src chunk (lane-major)
            pl.BlockSpec((None, edge_chunk, 1), lambda i: (i, 0, 0)),   # tgt chunk (sublane-major)
            pl.BlockSpec((n, d), lambda i: (0, 0)),                     # x    (resident)
            pl.BlockSpec((d, d), lambda i: (0, 0)),                     # W^T  (resident)
            pl.BlockSpec((1, d), lambda i: (0, 0)),                     # bias (resident)
        ],
        out_specs=pl.BlockSpec((num_node, d), lambda i: (0, 0)),        # resident, written at finalize
        scratch_shapes=[
            pltpu.VMEM((n, d), jnp.float32),            # h = relu(linear(x)), f32
            pltpu.VMEM((num_node, n), jnp.float32),     # accumulated adjacency A
        ],
    )

    # Advisory cost for the XLA scheduler + explicit scoped-VMEM budget (per perf review).
    flops = 2 * n * d * d + 2 * e_pad * num_node * n + 2 * num_node * n * d
    bytes_accessed = (n * d * 2) + (d * d * 2) + (d * 4) + (2 * e_pad * 4) + (num_node * d * 4)
    cost = pl.CostEstimate(flops=flops, transcendentals=num_node, bytes_accessed=bytes_accessed)

    resident_bytes = (n * d * 2) + (d * d * 2) + (d * 4) + (num_node * d * 4)   # x, W^T, b, out
    edge_bytes = 2 * edge_chunk * 4                                             # src + tgt chunk
    scratch_bytes = (n * d * 4) + (num_node * n * 4)                            # h, A
    vmem_limit = int(2 * (resident_bytes + edge_bytes) + scratch_bytes + (4 << 20))

    return pl.pallas_call(
        neigh_agg_kernel,
        out_shape=jax.ShapeDtypeStruct((num_node, d), jnp.float32),
        grid_spec=grid_spec,
        compiler_params=pltpu.CompilerParams(
            dimension_semantics=("arbitrary",),
            vmem_limit_bytes=vmem_limit,
        ),
        cost_estimate=cost,
    )(src_lanes, tgt_cols, x_bf, w_t, b2d)


if __name__ == "__main__":
    key = jax.random.PRNGKey(0)
    k_x, k_w, k_b, k_s, k_t = jax.random.split(key, 5)

    N = 16          # number of nodes with features (rows of x)
    D = 128         # embed_dim
    E = 32          # number of edges
    NUM_NODE = 16   # num_node argument (rows of the aggregated output)

    x = jax.random.normal(k_x, (N, D), dtype=jnp.float32)
    weight = jax.random.normal(k_w, (D, D), dtype=jnp.float32) * 0.05   # torch layout [out, in]
    bias = jax.random.normal(k_b, (D,), dtype=jnp.float32) * 0.05
    src = jax.random.randint(k_s, (E,), 0, NUM_NODE, dtype=jnp.int32)
    tgt = jax.random.randint(k_t, (E,), 0, N, dtype=jnp.int32)
    edge_index = jnp.stack([src, tgt], axis=0)

    out = neigh_agg(x, weight, bias, edge_index, NUM_NODE)
    out = jax.block_until_ready(out)

    # Reference 1: mirrors the kernel's documented numerics (bf16 Linear inputs, f32
    # everywhere else, exact divide).  Remaining difference is f32 accumulation order only.
    h_k = jnp.maximum(
        jnp.dot(x.astype(jnp.bfloat16), weight.T.astype(jnp.bfloat16),
                preferred_element_type=jnp.float32) + bias, 0.0)
    cnt = jnp.zeros((NUM_NODE,), jnp.float32).at[src].add(1.0)
    ref_k = (jnp.zeros((NUM_NODE, D), jnp.float32).at[src].add(h_k[tgt])
             / jnp.maximum(cnt, 1.0)[:, None])
    np.testing.assert_allclose(np.asarray(out), np.asarray(ref_k), rtol=1e-3, atol=1e-3)

    # Reference 2: plain f32 PyTorch semantics; only deviation is the bf16 Linear inputs.
    h_f = jnp.maximum(x @ weight.T + bias, 0.0)
    ref_f = (jnp.zeros((NUM_NODE, D), jnp.float32).at[src].add(h_f[tgt])
             / jnp.maximum(cnt, 1.0)[:, None])
    np.testing.assert_allclose(np.asarray(out), np.asarray(ref_f), rtol=2e-2, atol=2e-2)

    print("KERNEL_OK")
</pallas_src>

<mosaic_0001>
module attributes {stable_mosaic.version = 11 : i64} {
  func.func @neigh_agg_kernel(%arg0: i32, %arg1: memref<1x1x256xi32, #tpu.memory_space<vmem>>, %arg2: memref<1x256x1xi32, #tpu.memory_space<vmem>>, %arg3: memref<16x128xbf16, #tpu.memory_space<vmem>>, %arg4: memref<128x128xbf16, #tpu.memory_space<vmem>>, %arg5: memref<1x128xf32, #tpu.memory_space<vmem>>, %arg6: memref<16x128xf32, #tpu.memory_space<vmem>>, %arg7: memref<16x128xf32, #tpu.memory_space<vmem>>, %arg8: memref<16x16xf32, #tpu.memory_space<vmem>>) attributes {dimension_semantics = [#tpu.dimension_semantics<arbitrary>], iteration_bounds = array<i64: 1>, scalar_prefetch = 0 : i64, scratch_operands = 2 : i64, tpu.core_type = #tpu.core_type<tc>, window_params = [{transform_indices = @transform_0, window_bounds = array<i64: 1, 1, 256>}, {transform_indices = @transform_1, window_bounds = array<i64: 1, 256, 1>}, {pipeline_mode = #tpu.pipeline_mode<synchronous>, transform_indices = @transform_2, window_bounds = array<i64: 16, 128>}, {pipeline_mode = #tpu.pipeline_mode<synchronous>, transform_indices = @transform_3, window_bounds = array<i64: 128, 128>}, {pipeline_mode = #tpu.pipeline_mode<synchronous>, transform_indices = @transform_4, window_bounds = array<i64: 1, 128>}, {pipeline_mode = #tpu.pipeline_mode<synchronous>, transform_indices = @transform_5, window_bounds = array<i64: 16, 128>}]} {
    %c0_i32 = arith.constant 0 : i32
    %0 = arith.cmpi eq, %arg0, %c0_i32 : i32
    %1 = arith.extui %0 : i1 to i32
    %c0_i32_0 = arith.constant 0 : i32
    %2 = arith.cmpi ne, %1, %c0_i32_0 : i32
    scf.if %2 {
      %c0_12 = arith.constant 0 : index
      %c0_13 = arith.constant 0 : index
      %26 = vector.load %arg3[%c0_12, %c0_13] : memref<16x128xbf16, #tpu.memory_space<vmem>>, vector<16x128xbf16>
      %c0_14 = arith.constant 0 : index
      %c0_15 = arith.constant 0 : index
      %27 = vector.load %arg4[%c0_14, %c0_15] : memref<128x128xbf16, #tpu.memory_space<vmem>>, vector<128x128xbf16>
      %cst_16 = arith.constant dense<0.000000e+00> : vector<16x128xf32>
      %28 = tpu.matmul %26, %27, %cst_16 {dimension_numbers = #tpu.dot_dimension_numbers<[1], [0], [0], [1], [0, 0, 1, 1], [], []>} : vector<16x128xbf16>, vector<128x128xbf16>, vector<16x128xf32> -> vector<16x128xf32>
      %c0_17 = arith.constant 0 : index
      %c0_18 = arith.constant 0 : index
      %29 = vector.load %arg5[%c0_17, %c0_18] : memref<1x128xf32, #tpu.memory_space<vmem>>, vector<1x128xf32>
      %30 = vector.broadcast %29 : vector<1x128xf32> to vector<16x128xf32>
      %31 = arith.addf %28, %30 : vector<16x128xf32>
      %cst_19 = arith.constant 0.000000e+00 : f32
      %32 = vector.broadcast %cst_19 : f32 to vector<16x128xf32>
      %33 = arith.maximumf %31, %32 : vector<16x128xf32>
      %c0_20 = arith.constant 0 : index
      %c0_21 = arith.constant 0 : index
      %34 = vector.load %arg7[%c0_20, %c0_21] : memref<16x128xf32, #tpu.memory_space<vmem>>, vector<16x128xf32>
      tpu.vector_store %arg7[%c0_20, %c0_21], %33 {strides = array<i32>} : memref<16x128xf32, #tpu.memory_space<vmem>>, vector<16x128xf32>,
      %cst_22 = arith.constant 0.000000e+00 : f32
      %35 = vector.broadcast %cst_22 : f32 to vector<16x16xf32>
      %c0_23 = arith.constant 0 : index
      %c0_24 = arith.constant 0 : index
      %36 = vector.load %arg8[%c0_23, %c0_24] : memref<16x16xf32, #tpu.memory_space<vmem>>, vector<16x16xf32>
      tpu.vector_store %arg8[%c0_23, %c0_24], %35 {strides = array<i32>} : memref<16x16xf32, #tpu.memory_space<vmem>>, vector<16x16xf32>,
    } else {
    }
    %c0 = arith.constant 0 : index
    %c0_1 = arith.constant 0 : index
    %c0_2 = arith.constant 0 : index
    %3 = vector.load %arg1[%c0, %c0_1, %c0_2] : memref<1x1x256xi32, #tpu.memory_space<vmem>>, vector<1x1x256xi32>
    %4 = vector.shape_cast %3 : vector<1x1x256xi32> to vector<1x256xi32>
    %c0_3 = arith.constant 0 : index
    %c0_4 = arith.constant 0 : index
    %c0_5 = arith.constant 0 : index
    %5 = vector.load %arg2[%c0_3, %c0_4, %c0_5] : memref<1x256x1xi32, #tpu.memory_space<vmem>>, vector<1x256x1xi32>
    %6 = vector.shape_cast %5 : vector<1x256x1xi32> to vector<256x1xi32>
    %7 = tpu.iota {dimensions = array<i32: 0>} : vector<16x256xi32>
    %8 = vector.broadcast %4 : vector<1x256xi32> to vector<16x256xi32>
    %9 = arith.cmpi eq, %8, %7 : vector<16x256xi32>
    %10 = arith.extui %9 : vector<16x256xi1> to vector<16x256xi32>
    %11 = arith.sitofp %10 : vector<16x256xi32> to vector<16x256xf32>
    %12 = arith.truncf %11 : vector<16x256xf32> to vector<16x256xbf16>
    %13 = tpu.iota {dimensions = array<i32: 1>} : vector<256x16xi32>
    %14 = vector.broadcast %6 : vector<256x1xi32> to vector<256x16xi32>
    %15 = arith.cmpi eq, %14, %13 : vector<256x16xi32>
    %16 = arith.extui %15 : vector<256x16xi1> to vector<256x16xi32>
    %17 = arith.sitofp %16 : vector<256x16xi32> to vector<256x16xf32>
    %18 = arith.truncf %17 : vector<256x16xf32> to vector<256x16xbf16>
    %c0_6 = arith.constant 0 : index
    %c0_7 = arith.constant 0 : index
    %19 = vector.load %arg8[%c0_6, %c0_7] : memref<16x16xf32, #tpu.memory_space<vmem>>, vector<16x16xf32>
    %cst = arith.constant dense<0.000000e+00> : vector<16x16xf32>
    %20 = tpu.matmul %12, %18, %cst {dimension_numbers = #tpu.dot_dimension_numbers<[1], [0], [0], [1], [0, 0, 1, 1], [], []>} : vector<16x256xbf16>, vector<256x16xbf16>, vector<16x16xf32> -> vector<16x16xf32>
    %21 = arith.addf %19, %20 : vector<16x16xf32>
    %c0_8 = arith.constant 0 : index
    %c0_9 = arith.constant 0 : index
    %22 = vector.load %arg8[%c0_8, %c0_9] : memref<16x16xf32, #tpu.memory_space<vmem>>, vector<16x16xf32>
    tpu.vector_store %arg8[%c0_8, %c0_9], %21 {strides = array<i32>} : memref<16x16xf32, #tpu.memory_space<vmem>>, vector<16x16xf32>,
    %c0_i32_10 = arith.constant 0 : i32
    %23 = arith.cmpi eq, %arg0, %c0_i32_10 : i32
    %24 = arith.extui %23 : i1 to i32
    %c0_i32_11 = arith.constant 0 : i32
    %25 = arith.cmpi ne, %24, %c0_i32_11 : i32
    scf.if %25 {
      %c0_12 = arith.constant 0 : index
      %c0_13 = arith.constant 0 : index
      %26 = vector.load %arg8[%c0_12, %c0_13] : memref<16x16xf32, #tpu.memory_space<vmem>>, vector<16x16xf32>
      %cst_14 = arith.constant dense<0.000000e+00> : vector<16xf32>
      %27 = vector.multi_reduction <add>, %26, %cst_14 [1] : vector<16x16xf32> to vector<16xf32>
      %28 = vector.shape_cast %27 : vector<16xf32> to vector<16x1xf32>
      %c0_15 = arith.constant 0 : index
      %c0_16 = arith.constant 0 : index
      %29 = vector.load %arg7[%c0_15, %c0_16] : memref<16x128xf32, #tpu.memory_space<vmem>>, vector<16x128xf32>
      %cst_17 = arith.constant dense<0.000000e+00> : vector<16x128xf32>
      %30 = tpu.matmul %26, %29, %cst_17 {dimension_numbers = #tpu.dot_dimension_numbers<[1], [0], [0], [1], [0, 0, 1, 1], [], []>} : vector<16x16xf32>, vector<16x128xf32>, vector<16x128xf32> -> vector<16x128xf32>
      %cst_18 = arith.constant 1.000000e+00 : f32
      %31 = vector.broadcast %cst_18 : f32 to vector<16x1xf32>
      %32 = arith.maximumf %28, %31 : vector<16x1xf32>
      %cst_19 = arith.constant 1.000000e+00 : f32
      %33 = vector.broadcast %cst_19 : f32 to vector<16x1xf32>
      %34 = arith.divf %33, %32 : vector<16x1xf32>
      %35 = vector.broadcast %34 : vector<16x1xf32> to vector<16x128xf32>
      %36 = arith.mulf %30, %35 : vector<16x128xf32>
      %c0_20 = arith.constant 0 : index
      %c0_21 = arith.constant 0 : index
      %37 = vector.load %arg6[%c0_20, %c0_21] : memref<16x128xf32, #tpu.memory_space<vmem>>, vector<16x128xf32>
      tpu.vector_store %arg6[%c0_20, %c0_21], %36 {strides = array<i32>} : memref<16x128xf32, #tpu.memory_space<vmem>>, vector<16x128xf32>,
    } else {
    }
    return
  }
  func.func @transform_0(%arg0: i32) -> (i32, i32, i32) {
    %c0_i32 = arith.constant 0 : i32
    %c0_i32_0 = arith.constant 0 : i32
    %c0_i32_1 = arith.constant 0 : i32
    return %arg0, %c0_i32, %c0_i32_0 : i32, i32, i32
  }
  func.func @transform_1(%arg0: i32) -> (i32, i32, i32) {
    %c0_i32 = arith.constant 0 : i32
    %c0_i32_0 = arith.constant 0 : i32
    %c0_i32_1 = arith.constant 0 : i32
    return %arg0, %c0_i32, %c0_i32_0 : i32, i32, i32
  }
  func.func @transform_2(%arg0: i32) -> (i32, i32) {
    %c0_i32 = arith.constant 0 : i32
    %c0_i32_0 = arith.constant 0 : i32
    %c0_i32_1 = arith.constant 0 : i32
    return %c0_i32, %c0_i32_0 : i32, i32
  }
  func.func @transform_3(%arg0: i32) -> (i32, i32) {
    %c0_i32 = arith.constant 0 : i32
    %c0_i32_0 = arith.constant 0 : i32
    %c0_i32_1 = arith.constant 0 : i32
    return %c0_i32, %c0_i32_0 : i32, i32
  }
  func.func @transform_4(%arg0: i32) -> (i32, i32) {
    %c0_i32 = arith.constant 0 : i32
    %c0_i32_0 = arith.constant 0 : i32
    %c0_i32_1 = arith.constant 0 : i32
    return %c0_i32, %c0_i32_0 : i32, i32
  }
  func.func @transform_5(%arg0: i32) -> (i32, i32) {
    %c0_i32 = arith.constant 0 : i32
    %c0_i32_0 = arith.constant 0 : i32
    %c0_i32_1 = arith.constant 0 : i32
    return %c0_i32, %c0_i32_0 : i32, i32
  }
}

</mosaic_0001>

<bundles_post_ra>
// kernel: tpu_custom_call.1
= control target key start
LH: loop header
LB: loop body
LE: loop exit
PB: predicated region body
PF: predicated region fallthrough
CT: control target
= control target key end

     0   :  { %v785_v2 = vmov 0   ;;  %s1040_s0 = inlined_call_operand.vmem [shape: s32[1,1,256], index: 0, kind: input, shape index: {}]   ;;  %s1041_s1 = inlined_call_operand.vmem [shape: s32[1,256,1], index: 1, kind: input, shape index: {}]   ;;  %s1042_s2 = inlined_call_operand.vmem [shape: bf16[16,128], index: 2, kind: input, shape index: {}]   ;;  %s1043_s3 = inlined_call_operand.vmem [shape: bf16[128,128], index: 3, kind: input, shape index: {}]   ;;  %s1044_s4 = inlined_call_operand.vmem [shape: f32[1,128], index: 4, kind: input, shape index: {}]   ;;  %s1045_s5 = inlined_call_operand.hbm [shape: f32[16,128], index: 5, kind: output, shape index: {}]  }
   0x1   :  { %v170_v0 = vld [vmem:[%s1041_s1 + $0x80] sm:$0xff]  ;;  %747 = vset.pattern.permute.xlu1 %v785_v2  ;;  %746 = vset.pattern.permute.xlu0 %v785_v2  ;;  %v171_v3 = vld [vmem:[%s1041_s1 + $0x88] sm:$0xff]  ;;  %v172_v5 = vld [vmem:[%s1041_s1 + $0x90] sm:$0xff] }
   0x2   :  { %v154_v1 = vld [vmem:[%s1041_s1] sm:$0xff]  ;;  %262 = vperm.xlu0 %746, %v170_v0   ;;  %v155_v4 = vld [vmem:[%s1041_s1 + $0x8] sm:$0xff]  ;;  %v173_v6 = vld [vmem:[%s1041_s1 + $0x98] sm:$0xff] }
   0x3   :  { %214 = vperm.xlu1 %747, %v154_v1   ;;  %v156_v7 = vld [vmem:[%s1041_s1 + $0x10] sm:$0xff]  ;;  %v157_v8 = vld [vmem:[%s1041_s1 + $0x18] sm:$0xff]  ;;  %v174_v9 = vld [vmem:[%s1041_s1 + $0xa0] sm:$0xff] }
   0x4   :  { %v175_v10 = vld [vmem:[%s1041_s1 + $0xa8] sm:$0xff] }
   0x6   :  { %265 = vperm.xlu0 %746, %v171_v3  }
   0x7   :  { %217 = vperm.xlu1 %747, %v155_v4  }
   0xa   :  { %268 = vperm.xlu0 %746, %v172_v5  }
   0xb   :  { %271 = vperm.xlu1 %747, %v173_v6  }
   0xe   :  { %220 = vperm.xlu0 %746, %v156_v7  }
   0xf   :  { %223 = vperm.xlu1 %747, %v157_v8  }
  0x10   :  { %10 = vsyncpa [#allocation5], 0  ;;  %v158_v11 = vld [vmem:[%s1041_s1 + $0x20] sm:$0xff]  ;;  %v159_v12 = vld [vmem:[%s1041_s1 + $0x28] sm:$0xff]  ;;  %v786_v20 = vmov 0.0   ;;  %v186_v39 = vlaneseq  ;;  %vm787_vm0 = vmmov 0  }
  0x11   :  { %v176_v13 = vld [vmem:[%s1041_s1 + $0xb0] sm:$0xff]  ;;  %v177_v14 = vld [vmem:[%s1041_s1 + $0xb8] sm:$0xff]  ;;  %v178_v17 = vld [vmem:[%s1041_s1 + $0xc0] sm:$0xff]  ;;  %708 = vmatprep.subr.bf16.mxu0 %v786_v20  ;;  %724 = vmatprep.mubr.msk.bf16.mxu0 %vm787_vm0, %v786_v20  ;;  %v788_v51 = vmov 1.0|1.0  }
  0x12   :  { %274 = vperm.xlu0 %746, %v174_v9   ;;  %v160_v15 = vld [vmem:[%s1041_s1 + $0x30] sm:$0xff]  ;;  %v161_v16 = vld [vmem:[%s1041_s1 + $0x38] sm:$0xff]  ;;  %v179_v18 = vld [vmem:[%s1041_s1 + $0xc8] sm:$0xff]  ;;  %v187_v43 = vshrl.u32 %v186_v39, 7  ;;  %v962_v55 = vand.u32 127, %v186_v39 }
  0x13   :  { %277 = vperm.xlu1 %747, %v175_v10   ;;  %v748_v19 = vld [vmem:[%s1043_s3] sm:$0xff]   ;;  %v163_v22 = vld [vmem:[%s1041_s1 + $0x48] sm:$0xff]  ;;  %v180_v24 = vld [vmem:[%s1041_s1 + $0xd0] sm:$0xff] }
  0x14   :  { %709 = vmatpush3.bf16.msra.mxu0 %v748_v19  ;;  %v162_v21 = vld [vmem:[%s1041_s1 + $0x40] sm:$0xff]  ;;  %v749_v23 = vld [vmem:[%s1043_s3 + $0x8] sm:$0xff]   ;;  %v181_v25 = vld [vmem:[%s1041_s1 + $0xd8] sm:$0xff]  ;;  %v195_v44 = vsub.s32 1, %v187_v43  ;;  %v191_v46 = vsub.s32 0, %v187_v43  ;;  %v188_v48 = vadd.s32 8, %v187_v43 }
  0x15   :  { %710 = vmatprep.subr.bf16.mxu0 %v786_v20  ;;  %v750_v26 = vld [vmem:[%s1043_s3 + $0x10] sm:$0xff]   ;;  %v165_v28 = vld [vmem:[%s1041_s1 + $0x58] sm:$0xff]  ;;  %v182_v30 = vld [vmem:[%s1041_s1 + $0xe0] sm:$0xff] }
  0x16   :  { %226 = vperm.xlu0 %746, %v158_v11   ;;  %v164_v27 = vld [vmem:[%s1041_s1 + $0x50] sm:$0xff]  ;;  %v751_v29 = vld [vmem:[%s1043_s3 + $0x18] sm:$0xff]   ;;  %v183_v31 = vld [vmem:[%s1041_s1 + $0xe8] sm:$0xff] }
  0x17   :  { %229 = vperm.xlu1 %747, %v159_v12   ;;  %v752_v32 = vld [vmem:[%s1043_s3 + $0x20] sm:$0xff]   ;;  %v167_v34 = vld [vmem:[%s1041_s1 + $0x68] sm:$0xff]  ;;  %v184_v36 = vld [vmem:[%s1041_s1 + $0xf0] sm:$0xff] }
  0x18   :  { %711 = vmatpush3.bf16.msra.mxu0 %v749_v23  ;;  %v166_v33 = vld [vmem:[%s1041_s1 + $0x60] sm:$0xff]  ;;  %v753_v35 = vld [vmem:[%s1043_s3 + $0x28] sm:$0xff]   ;;  %v185_v37 = vld [vmem:[%s1041_s1 + $0xf8] sm:$0xff] }
  0x19   :  { %712 = vmatprep.subr.bf16.mxu0 %v786_v20  ;;  %v754_v38 = vld [vmem:[%s1043_s3 + $0x30] sm:$0xff]   ;;  %v169_v41 = vld [vmem:[%s1041_s1 + $0x78] sm:$0xff]  ;;  %v153_v45 = vld [vmem:[%s1040_s0] sm:$0x3] }
  0x1a   :  { %280 = vperm.xlu0 %746, %v176_v13   ;;  %v168_v40 = vld [vmem:[%s1041_s1 + $0x70] sm:$0xff]  ;;  %v755_v42 = vld [vmem:[%s1043_s3 + $0x38] sm:$0xff]   ;;  %v756_v47 = vld [vmem:[%s1042_s2] sm:$0xff]   ;;  %v196_v49 = vrot.slane %v153_v45, %v195_v44  ;;  %v192_v50 = vrot.slane %v153_v45, %v191_v46  ;;  %s789_s2 = smov [#allocation4]  }
  0x1b   :  { %283 = vperm.xlu1 %747, %v177_v14   ;;  %v589_v23 = vld [vmem:[%s1044_s4] ss:$0 sm:$0xff]  ;;  %s578_s3 = sshll.u32 %s789_s2, 4  ;;  %s579_s3 = int_to_ptr.vmem [resolvable:$true] %s578_s3 }
  0x1c   :  { %713 = vmatpush3.bf16.msra.mxu0 %v750_v26  ;;  %vm198_vm1 = vcmp.eq.s32.totalorder %v196_v49, %v187_v43  ;;  %vm200_vm2 = vcmp.eq.s32.totalorder %v196_v49, %v188_v48  ;;  %vm197_vm4 = vcmp.eq.s32.totalorder %v192_v50, %v187_v43  ;;  %vm199_vm5 = vcmp.eq.s32.totalorder %v192_v50, %v188_v48  ;;  %s761_s4 = scalar_lea.vmem %s579_s3, 256  ;;  %p766_p1 = scmp.lt.s32.totalorder %s579_s3, %s579_s3 }
  0x1d   :  { %714 = vmatprep.subr.bf16.mxu0 %v786_v20  ;;  %vm667_vm3 = vmpackc.low %vm200_vm2, %vm198_vm1  ;;  %p762_p0 = scmp.ne.s32.totalorder %s579_s3, %s761_s4  ;;  %p767_p2 = scmp.lt.s32.totalorder %s761_s4, %s761_s4 }
  0x1e   :  { %232 = vperm.xlu0 %746, %v160_v15   ;;  %668 = vmatprep.mubr.msk.bf16.mxu1 %vm667_vm3, %v788_v51  ;;  %vm958_vm6 = vmpackc.low %vm199_vm5, %vm197_vm4 }
  0x1f   :  { %235 = vperm.xlu1 %747, %v161_v16   ;;  %p768_p3 = por %p767_p2, %p766_p1 }
  0x20   :  { %715 = vmatpush3.bf16.msra.mxu0 %v751_v29 }
  0x21   :  { %716 = vmatprep.subr.bf16.mxu0 %v786_v20  ;;  %p769_p4 = pnand %p768_p3, %p762_p0 }
  0x22   :  { %286 = vperm.xlu0 %746, %v178_v17  }
  0x23   :  { %289 = vperm.xlu1 %747, %v179_v18  }
  0x24   :  { %717 = vmatpush3.bf16.msra.mxu0 %v752_v32 }
  0x25   :  { %718 = vmatprep.subr.bf16.mxu0 %v786_v20 }
  0x26   :  { %238 = vperm.xlu0 %746, %v162_v21  }
  0x27   :  { %241 = vperm.xlu1 %747, %v163_v22  }
  0x28   :  { %719 = vmatpush3.bf16.msra.mxu0 %v753_v35 }
  0x29   :  { %720 = vmatprep.subr.bf16.mxu0 %v786_v20 }
  0x2a   :  { %292 = vperm.xlu0 %746, %v180_v24  }
  0x2b   :  { %295 = vperm.xlu1 %747, %v181_v25  }
  0x2c   :  { %721 = vmatpush3.bf16.msra.mxu0 %v754_v38 }
  0x2d   :  { %722 = vmatprep.subr.bf16.mxu0 %v786_v20 }
  0x2e   :  { %244 = vperm.xlu0 %746, %v164_v27  }
  0x2f   :  { %247 = vperm.xlu1 %747, %v165_v28  }
  0x30   :  { %723 = vmatpush3.bf16.msra.mxu0 %v755_v42 }
  0x32   :  { %298 = vperm.xlu0 %746, %v182_v30  }
  0x33   :  { %301 = vperm.xlu1 %747, %v183_v31   ;;  %725 = vmatmul.mubr.bf16.vlgmr.msra.gmra.mrb[0].mxu0 %v756_v47 }
  0x36   :  { %250 = vperm.xlu0 %746, %v166_v33  }
  0x37   :  { %253 = vperm.xlu1 %747, %v167_v34  }
  0x3a   :  { %304 = vperm.xlu0 %746, %v184_v36  }
  0x3b   :  { %307 = vperm.xlu1 %747, %v185_v37  }
  0x3e   :  { %256 = vperm.xlu0 %746, %v168_v40  }
  0x3f   :  { %259 = vperm.xlu1 %747, %v169_v41  }
  0x81   :  { %v263_v53 = vpop.permute.xlu0 %262 }
  0x82   :  { %v215_v54 = vpop.permute.xlu1 %214  ;;  %vm325_vm10 = vcmp.eq.s32.totalorder %v263_v53, %v962_v55 }
  0x83   :  { %vm309_vm7 = vcmp.eq.s32.totalorder %v215_v54, %v962_v55 }
  0x85   :  { %v266_v56 = vpop.permute.xlu0 %265 }
  0x86   :  { %v218_v57 = vpop.permute.xlu1 %217  ;;  %vm326_vm8 = vcmp.eq.s32.totalorder %v266_v56, %v962_v55 }
  0x87   :  { %vm310_vm9 = vcmp.eq.s32.totalorder %v218_v57, %v962_v55  ;;  %vm651_vm12 = vmpackc.low %vm326_vm8, %vm325_vm10 }
  0x88   :  { %vm635_vm11 = vmpackc.low %vm310_vm9, %vm309_vm7  ;;  %682 = vmatprep.subr.msk.bf16.mxu1 %vm651_vm12, %v788_v51 }
  0x89   :  { %v269_v58 = vpop.permute.xlu0 %268  ;;  %683 = vmatpush3.bf16.msk.msra.mxu1 %vm635_vm11, %v788_v51 }
  0x8a   :  { %v272_v59 = vpop.permute.xlu1 %271  ;;  %vm327_vm13 = vcmp.eq.s32.totalorder %v269_v58, %v962_v55 }
  0x8b   :  { %vm328_vm14 = vcmp.eq.s32.totalorder %v272_v59, %v962_v55 }
  0x8c   :  { %vm653_vm15 = vmpackc.low %vm328_vm14, %vm327_vm13 }
  0x8d   :  { %684 = vmatprep.subr.msk.bf16.mxu1 %vm653_vm15, %v788_v51  ;;  %v221_v60 = vpop.permute.xlu0 %220 }
  0x8e   :  { %v224_v61 = vpop.permute.xlu1 %223  ;;  %vm311_vm0 = vcmp.eq.s32.totalorder %v221_v60, %v962_v55 }
  0x8f   :  { %vm312_vm1 = vcmp.eq.s32.totalorder %v224_v61, %v962_v55 }
  0x90   :  { %vm637_vm2 = vmpackc.low %vm312_vm1, %vm311_vm0 }
  0x91   :  { %685 = vmatpush3.bf16.msk.msra.mxu1 %vm637_vm2, %v788_v51  ;;  %v275_v62 = vpop.permute.xlu0 %274 }
  0x92   :  { %v278_v63 = vpop.permute.xlu1 %277  ;;  %vm329_vm3 = vcmp.eq.s32.totalorder %v275_v62, %v962_v55 }
  0x93   :  { %vm330_vm4 = vcmp.eq.s32.totalorder %v278_v63, %v962_v55 }
  0x94   :  { %vm655_vm5 = vmpackc.low %vm330_vm4, %vm329_vm3 }
  0x95   :  { %686 = vmatprep.subr.msk.bf16.mxu1 %vm655_vm5, %v788_v51  ;;  %v227_v0 = vpop.permute.xlu0 %226 }
  0x96   :  { %v230_v1 = vpop.permute.xlu1 %229  ;;  %vm313_vm7 = vcmp.eq.s32.totalorder %v227_v0, %v962_v55 }
  0x97   :  { %vm314_vm8 = vcmp.eq.s32.totalorder %v230_v1, %v962_v55 }
  0x98   :  { %vm639_vm9 = vmpackc.low %vm314_vm8, %vm313_vm7 }
  0x99   :  { %687 = vmatpush3.bf16.msk.msra.mxu1 %vm639_vm9, %v788_v51  ;;  %v281_v2 = vpop.permute.xlu0 %280 }
  0x9a   :  { %v284_v3 = vpop.permute.xlu1 %283  ;;  %vm331_vm10 = vcmp.eq.s32.totalorder %v281_v2, %v962_v55 }
  0x9b   :  { %vm332_vm11 = vcmp.eq.s32.totalorder %v284_v3, %v962_v55 }
  0x9c   :  { %vm657_vm12 = vmpackc.low %vm332_vm11, %vm331_vm10 }
  0x9d   :  { %688 = vmatprep.subr.msk.bf16.mxu1 %vm657_vm12, %v788_v51  ;;  %v233_v4 = vpop.permute.xlu0 %232 }
  0x9e   :  { %v236_v5 = vpop.permute.xlu1 %235  ;;  %vm315_vm13 = vcmp.eq.s32.totalorder %v233_v4, %v962_v55 }
  0x9f   :  { %vm316_vm14 = vcmp.eq.s32.totalorder %v236_v5, %v962_v55 }
  0xa0   :  { %vm641_vm15 = vmpackc.low %vm316_vm14, %vm315_vm13 }
  0xa1   :  { %689 = vmatpush3.bf16.msk.msra.mxu1 %vm641_vm15, %v788_v51  ;;  %v287_v6 = vpop.permute.xlu0 %286 }
  0xa2   :  { %v290_v7 = vpop.permute.xlu1 %289  ;;  %vm333_vm0 = vcmp.eq.s32.totalorder %v287_v6, %v962_v55 }
  0xa3   :  { %vm334_vm1 = vcmp.eq.s32.totalorder %v290_v7, %v962_v55 }
  0xa4   :  { %vm659_vm2 = vmpackc.low %vm334_vm1, %vm333_vm0 }
  0xa5   :  { %690 = vmatprep.subr.msk.bf16.mxu1 %vm659_vm2, %v788_v51  ;;  %v239_v8 = vpop.permute.xlu0 %238 }
  0xa6   :  { %v242_v9 = vpop.permute.xlu1 %241  ;;  %vm317_vm3 = vcmp.eq.s32.totalorder %v239_v8, %v962_v55 }
  0xa7   :  { %vm318_vm4 = vcmp.eq.s32.totalorder %v242_v9, %v962_v55 }
  0xa8   :  { %vm643_vm5 = vmpackc.low %vm318_vm4, %vm317_vm3 }
  0xa9   :  { %691 = vmatpush3.bf16.msk.msra.mxu1 %vm643_vm5, %v788_v51  ;;  %v293_v10 = vpop.permute.xlu0 %292 }
  0xaa   :  { %v296_v11 = vpop.permute.xlu1 %295  ;;  %vm335_vm7 = vcmp.eq.s32.totalorder %v293_v10, %v962_v55 }
  0xab   :  { %vm336_vm8 = vcmp.eq.s32.totalorder %v296_v11, %v962_v55 }
  0xac   :  { %vm661_vm9 = vmpackc.low %vm336_vm8, %vm335_vm7 }
  0xad   :  { %692 = vmatprep.subr.msk.bf16.mxu1 %vm661_vm9, %v788_v51  ;;  %v245_v12 = vpop.permute.xlu0 %244 }
  0xae   :  { %v248_v13 = vpop.permute.xlu1 %247  ;;  %vm319_vm10 = vcmp.eq.s32.totalorder %v245_v12, %v962_v55 }
  0xaf   :  { %vm320_vm11 = vcmp.eq.s32.totalorder %v248_v13, %v962_v55 }
  0xb0   :  { %vm645_vm12 = vmpackc.low %vm320_vm11, %vm319_vm10  ;;  %vm150_vm10 = vcmask 130048  }
  0xb1   :  { %693 = vmatpush3.bf16.msk.msra.mxu1 %vm645_vm12, %v788_v51  ;;  %v299_v14 = vpop.permute.xlu0 %298  ;;  %151 = vst.msk [vmem:[#allocation3] sm:$0xff] %vm150_vm10, %v786_v20  ;;  %152 = vst.msk [vmem:[#allocation3 + $0x8] sm:$0xff] %vm150_vm10, %v786_v20 }
  0xb2   :  { %v302_v15 = vpop.permute.xlu1 %301  ;;  %vm337_vm13 = vcmp.eq.s32.totalorder %v299_v14, %v962_v55 }
  0xb3   :  { %vm338_vm14 = vcmp.eq.s32.totalorder %v302_v15, %v962_v55 }
  0xb4   :  { %vm663_vm15 = vmpackc.low %vm338_vm14, %vm337_vm13 }
  0xb5   :  { %694 = vmatprep.subr.msk.bf16.mxu1 %vm663_vm15, %v788_v51  ;;  %v251_v16 = vpop.permute.xlu0 %250 }
  0xb6   :  { %v254_v17 = vpop.permute.xlu1 %253  ;;  %vm321_vm0 = vcmp.eq.s32.totalorder %v251_v16, %v962_v55 }
  0xb7   :  { %vm322_vm1 = vcmp.eq.s32.totalorder %v254_v17, %v962_v55 }
  0xb8   :  { %vm647_vm2 = vmpackc.low %vm322_vm1, %vm321_vm0  ;;  %v421_v34 = vld [vmem:[#allocation3] sm:$0xff]  ;;  %v422_v38 = vld [vmem:[#allocation3 + $0x8] sm:$0xff] }
  0xb9   :  { %695 = vmatpush3.bf16.msk.msra.mxu1 %vm647_vm2, %v788_v51  ;;  %v305_v18 = vpop.permute.xlu0 %304 }
  0xba   :  { %v308_v19 = vpop.permute.xlu1 %307  ;;  %vm339_vm3 = vcmp.eq.s32.totalorder %v305_v18, %v962_v55 }
  0xbb   :  { %vm340_vm4 = vcmp.eq.s32.totalorder %v308_v19, %v962_v55 }
  0xbc   :  { %vm665_vm5 = vmpackc.low %vm340_vm4, %vm339_vm3 }
  0xbd   :  { %696 = vmatprep.subr.msk.bf16.mxu1 %vm665_vm5, %v788_v51  ;;  %v257_v21 = vpop.permute.xlu0 %256 }
  0xbe   :  { %v260_v22 = vpop.permute.xlu1 %259  ;;  %vm323_vm7 = vcmp.eq.s32.totalorder %v257_v21, %v962_v55 }
  0xbf   :  { %vm324_vm8 = vcmp.eq.s32.totalorder %v260_v22, %v962_v55 }
  0xc0   :  { %vm649_vm9 = vmpackc.low %vm324_vm8, %vm323_vm7 }
  0xc1   :  { %697 = vmatpush3.bf16.msk.msra.mxu1 %vm649_vm9, %v788_v51 }
  0xc4   :  { %670 = vmatmul.mubr.msk.bf16.vlgmr.msra.gmra.mrb[0].mxu1 %vm958_vm6, %v788_v51 }
 0x106   :  { %v139_v24 = vpop.f32.mrb[0].mxu0 }
 0x107   :  { %v140_v25 = vadd.f32 %v589_v23, %v139_v24  ;;  %v726_v26 = vpop.f32.mrb[1].mxu0 }
 0x108   :  { %v142_v27 = vpop.f32.mrb[2].mxu0 }
 0x109   :  { %v146_v28 = vmax.f32 %v140_v25, 0.0  ;;  %v143_v29 = vadd.f32 %v589_v23, %v142_v27  ;;  %v727_v30 = vpop.f32.mrb[3].mxu0 }
 0x10b   :  { %v147_v31 = vmax.f32 %v143_v29, 0.0 }
 0x10d   :  { %v735_v32 = vpack.c.bf16 %v147_v31, %v146_v28 }
 0x10f   :  { %736 = vmatprep.subr.bf16.mxu0 %v735_v32 }
 0x110   :  { %738 = vmatpush3.bf16.msra.mxu0 %v735_v32 }
 0x197   :  { %v698_v33 = vpop.f32.mrb[0].mxu1 }
 0x198   :  { %v699_v35 = vpop.f32.mrb[1].mxu1 }
 0x199   :  { %v700_v36 = vadd.f32 %v699_v35, %v698_v33  ;;  %v701_v37 = vpop.f32.mrb[2].mxu1 }
 0x19a   :  { %v702_v39 = vpop.f32.mrb[3].mxu1 }
 0x19b   :  { %v464_v40 = vadd.f32 %v700_v36, %v421_v34  ;;  %v703_v20 = vadd.f32 %v702_v39, %v701_v37 }
 0x19d   :  { %467 = vst.msk [vmem:[#allocation3] sm:$0xff] %vm150_vm10, %v464_v40  ;;  %v465_v41 = vadd.f32 %v703_v20, %v422_v38 }
 0x19f   :  { %468 = vst.msk [vmem:[#allocation3 + $0x8] sm:$0xff] %vm150_vm10, %v465_v41 }
 0x1a4   :  { %v472_v42 = vld [vmem:[#allocation3] sm:$0xff] }
 0x1a5   :  { %732 = vmatprep.mubr.msk.f32.mxu0 %vm150_vm10, %v472_v42  ;;  %v474_v43 = vsel %vm150_vm10, %v472_v42, 0.0 }
 0x1a6   :  { %475 = vadd.xlane.f32.xlu0 %v474_v43  ;;  %v473_v44 = vld [vmem:[#allocation3 + $0x8] sm:$0xff] }
 0x1a7   :  { %733 = vmatmul.mubr.msk.f32.vlgmr.msra.gmra.mrb[4].mxu0 %vm150_vm10, %v473_v44  ;;  %v477_v45 = vsel %vm150_vm10, %v473_v44, 0.0 }
 0x1a8   :  { %478 = vadd.xlane.f32.xlu1 %v477_v45 }
 0x233   :  { %v476_v47 = vpop.xlane.xlu0 %475 }
 0x234   :  { %v563_v49 = vmax.f32 %v476_v47, 1.0 }
 0x235   :  { %v479_v46 = vpop.xlane.xlu1 %478 }
 0x236   :  { %v564_v48 = vmax.f32 %v479_v46, 1.0 }
 0x238   :  { %757 = vrcp.f32 %v564_v48 }
 0x239   :  { %759 = vrcp.f32 %v563_v49 }
 0x242   :  { %v758_v50 = vpop.eup %757 }
 0x243   :  { %v760_v52 = vpop.eup %759 }
 0x27a   :  { %v734_v51 = vpop.f32.mrb[4].mxu0 }
 0x27b   :  { %v570_v53 = vmul.f32 %v758_v50, %v734_v51  ;;  %v554_v54 = vpop.f32.mrb[5].mxu0 }
 0x27c   :  { %v569_v55 = vmul.f32 %v760_v52, %v554_v54 }
 0x27d   :  { %572 = vst [vmem:[#allocation4 + $0x8] sm:$0xff] %v570_v53 }
 0x27e   :  { %571 = vst [vmem:[#allocation4] sm:$0xff] %v569_v55 }
 0x27f   :  { %772 = shalt.err (!%p769_p4)
}
 0x280   :  { %s773_s29 = scalar_lea.hbm %s1045_s5, 256 }
 0x281   :  { %p774_p5 = scmp.ne.s32.totalorder %s1045_s5, %s773_s29  ;;  %p777_p6 = scmp.lt.u32.totalorder %s773_s29, %s1045_s5 }
 0x283   :  { %p779_p7 = pnand %p777_p6, %p774_p5 }
 0x285   :  { %782 = shalt.err (!%p779_p7)
}
 0x286   :  { %s790_s9 = smov 128   ;;  %s791_s10 = smov 8  }
 0x287   :  { %584 = dma.vmem_to_hbm [thread:$0]  %s579_s3, 256, %s1045_s5, [#allocation5], %s790_s9, %s790_s9, %s791_s10  }
 0x288   :  { %783 = dma.done.wait [#allocation5], 256  }
 0x289   :  { %784 = vsyncadd [#allocation5], 4294967040 }
 0x28a   :  { %588 = vsyncpa [#allocation5], 1 }

</bundles_post_ra>
